<compile_context>
chip_gen: v7x
topology: tpu7x:2x2x1
jax: 0.10.0
libtpu: 0.0.40
codegen_flags: <defaults>
</compile_context>

<pallas_src>
import functools
import math

import jax
import jax.numpy as jnp
from jax.experimental import pallas as pl
from jax.experimental.pallas import tpu as pltpu

LOG2 = math.log(2.0)
KP = 128  # lane-dense padded head-output width


def _ssp(x):
    # shifted softplus: ln(1 + e^x) - ln(2), numerically stable form (f32).
    return jnp.maximum(x, 0.0) + jnp.log(1.0 + jnp.exp(-jnp.abs(x))) - LOG2


# --------------------------- fused Pallas kernel ----------------------------


def fused_state_forward(z_col, n_atoms, n_mols, p):
    """z_col: (M, 1) int32 flattened atomic numbers.  Returns (B, KP) f32."""
    M = z_col.shape[0]
    NS, Hr = p['e1'].shape          # folded emb@w1r:  (NS, Hr)  bf16
    F = p['w2r'].shape[1]           # rep second dense (Hr, F)   bf16
    KH = p['w1h'].shape[1]          # concat heads w1  (F, K*H)  bf16
    KPc = p['w2h'].shape[1]         # padded heads w2  (K*H, KP) bf16
    B = n_mols

    def kernel(z_ref, e1_ref, b1r_ref, w2r_ref, b2r_ref,
               w1h_ref, b1h_ref, w2h_ref, b2h_ref, o_ref):
        # output block is resident across the (potential) atom-tile axis
        @pl.when(pl.program_id(0) == 0)
        def _():
            o_ref[...] = jnp.zeros_like(o_ref)

        z = z_ref[...]                                            # (tm, 1) i32
        tm = z.shape[0]
        ns = e1_ref.shape[0]

        # Embedding gather fused with rep first dense: one-hot @ (emb @ w1r).
        # TODO(synk): atomic numbers >= n_species give an all-zero one-hot
        # (zero embedding) rather than an error; fine for synthetic data.
        species = jax.lax.broadcasted_iota(jnp.int32, (tm, ns), 1)
        onehot = (species == z).astype(jnp.bfloat16)              # (tm, NS)
        h = jnp.dot(onehot, e1_ref[...],
                    preferred_element_type=jnp.float32) + b1r_ref[...]
        h = _ssp(h)                                               # (tm, Hr) f32

        # Representation second dense.
        rep = jnp.dot(h.astype(jnp.bfloat16), w2r_ref[...],
                      preferred_element_type=jnp.float32) + b2r_ref[...]

        # All Atomwise heads at once: (F -> K*H) -> ssp -> block-diag (K*H -> KP).
        g = jnp.dot(rep.astype(jnp.bfloat16), w1h_ref[...],
                    preferred_element_type=jnp.float32) + b1h_ref[...]
        g = _ssp(g)
        y_atom = jnp.dot(g.astype(jnp.bfloat16), w2h_ref[...],
                         preferred_element_type=jnp.float32) + b2h_ref[...]
        # y_atom: (tm, KP) f32, only first K lanes meaningful.

        # Molecule-membership matrix built in-kernel (no HBM input, no division):
        # seg[b, m] = 1 iff global atom index m falls in molecule b's row range.
        # TODO(synk): assumes fixed n_atoms per molecule and no padded atoms;
        # variable-length batches need a validity mask folded into seg.
        nb = o_ref.shape[0]
        base = pl.program_id(0) * tm
        atom_idx = jax.lax.broadcasted_iota(jnp.int32, (nb, tm), 1) + base
        mol_idx = jax.lax.broadcasted_iota(jnp.int32, (nb, tm), 0)
        lo = mol_idx * n_atoms
        seg = ((atom_idx >= lo) & (atom_idx < lo + n_atoms)).astype(jnp.float32)

        # Per-molecule sum over this tile's atoms: (B, tm) @ (tm, KP).
        # Correct only while the atom-tile grid axis is "arbitrary" (sequential).
        o_ref[...] += jnp.dot(seg, y_atom, preferred_element_type=jnp.float32)

    cost = pl.CostEstimate(
        flops=2 * M * (NS * Hr + Hr * F + F * KH + KH * KPc) + 2 * B * M * KPc,
        transcendentals=M * (Hr + KH),
        bytes_accessed=(M * 4 + NS * Hr * 2 + Hr * 4 + Hr * F * 2 + F * 4
                        + F * KH * 2 + KH * 4 + KH * KPc * 2 + KPc * 4
                        + B * KPc * 4),
    )

    # M is tiny here -> one grid step holding the whole flattened atom set.
    grid = (1,)

    return pl.pallas_call(
        kernel,
        out_shape=jax.ShapeDtypeStruct((B, KPc), jnp.float32),
        grid=grid,
        in_specs=[
            pl.BlockSpec((M, 1), lambda i: (i, 0)),       # atomic numbers
            pl.BlockSpec((NS, Hr), lambda i: (0, 0)),     # E1 = emb @ rep_w1
            pl.BlockSpec((1, Hr), lambda i: (0, 0)),      # rep b1
            pl.BlockSpec((Hr, F), lambda i: (0, 0)),      # rep w2
            pl.BlockSpec((1, F), lambda i: (0, 0)),       # rep b2
            pl.BlockSpec((F, KH), lambda i: (0, 0)),      # heads w1 (concat)
            pl.BlockSpec((1, KH), lambda i: (0, 0)),      # heads b1 (concat)
            pl.BlockSpec((KH, KPc), lambda i: (0, 0)),    # heads w2 (blk-diag, padded)
            pl.BlockSpec((1, KPc), lambda i: (0, 0)),     # heads b2 (padded)
        ],
        out_specs=pl.BlockSpec((B, KPc), lambda i: (0, 0)),
        compiler_params=pltpu.CompilerParams(
            dimension_semantics=("arbitrary",)),
        cost_estimate=cost,
    )(z_col, p['e1'], p['b1r'], p['w2r'], p['b2r'],
      p['w1h'], p['b1h'], p['w2h'], p['b2h'])


def _state_forward(Z, packed, *, head_names):
    """Jitted end-to-end forward: (B, N) int32 -> {name: (B, 1) f32}."""
    B, N = Z.shape
    M = B * N
    z_col = Z.reshape(M, 1).astype(jnp.int32)
    out_padded = fused_state_forward(z_col, N, B, packed)        # (B, KP)
    return {name: out_padded[:, k:k + 1] for k, name in enumerate(head_names)}


# -------------------- module wrappers (mirror the PyTorch classes) ----------


class Representation:
    """Embedding table + per-atom MLP parameters (fused into the kernel)."""

    def __init__(self, params, emb_table):
        self.params = params          # {'w1':(F,H),'b1':(1,H),'w2':(H,F),'b2':(1,F)}
        self.emb_table = emb_table    # (NS, F)


class Atomwise:
    """Output head params: dense(F->H) -> ssp -> dense(H->1) -> sum over atoms."""

    requires_dr = False

    def __init__(self, params):
        self.params = params   # {'w1': (F,H), 'b1': (1,H), 'w2': (H,1), 'b2': (1,1)}


class StateModel:
    def __init__(self, representation, output_modules, mapping=None):
        if not isinstance(output_modules, dict):
            raise ValueError('Dictionary expected for output_modules')
        self.representation = representation
        self.output_modules = output_modules
        self._get_mapping(output_modules, mapping)
        self.requires_dr = False
        for o in self.output_modules:
            if self.output_modules[o].requires_dr:
                self.requires_dr = True
                break
        # TODO(synk): the requires_dr=True branch (autograd w.r.t. positions
        # for forces) is not exercised; the synthetic heads need no derivative.
        self.module_results = {}
        self._pack_params()
        self._jit_forward = jax.jit(
            functools.partial(_state_forward, head_names=tuple(self._head_names)))

    def _pack_params(self):
        rep = self.representation.params
        emb = self.representation.emb_table
        # Fold embedding table into the rep first dense (exact in f32; bf16 cast
        # only for MXU operands).  E1 = emb @ w1r : (NS, Hr).
        e1 = jnp.dot(emb.astype(jnp.float32), rep['w1'].astype(jnp.float32))

        # Pack all Atomwise heads: first dense concatenated along hidden axis,
        # second dense block-diagonal and zero-padded to KP lanes (lane-dense
        # output store).
        names = list(self.output_modules.keys())
        heads = [self.output_modules[n].params for n in names]
        H = heads[0]['w1'].shape[1]
        K = len(heads)
        assert K <= KP
        w1h = jnp.concatenate([h['w1'] for h in heads], axis=1)       # (F, K*H)
        b1h = jnp.concatenate([h['b1'] for h in heads], axis=1)       # (1, K*H)
        w2h = jnp.zeros((K * H, KP), jnp.float32)
        b2h = jnp.zeros((1, KP), jnp.float32)
        for k, h in enumerate(heads):
            w2h = w2h.at[k * H:(k + 1) * H, k].set(h['w2'][:, 0])
            b2h = b2h.at[0, k].set(h['b2'][0, 0])

        self._head_names = names
        self._packed = {
            'e1': e1.astype(jnp.bfloat16),
            'b1r': rep['b1'].astype(jnp.float32),
            'w2r': rep['w2'].astype(jnp.bfloat16),
            'b2r': rep['b2'].astype(jnp.float32),
            'w1h': w1h.astype(jnp.bfloat16),
            'b1h': b1h.astype(jnp.float32),
            'w2h': w2h.astype(jnp.bfloat16),
            'b2h': b2h.astype(jnp.float32),
        }

    def forward(self, inputs):
        Z = inputs['_atomic_numbers']                 # (B, N) int32
        # TODO(synk): the per-atom 'representation' tensor never leaves VMEM
        # (fully fused with the heads), so it is not inserted into `inputs`.
        outs = self._jit_forward(Z, self._packed)     # {name: (B, 1)}
        module_results = {f'{name}:y': outs[name] for name in self._head_names}
        module_results = self._map_outputs(module_results)
        return module_results

    def _get_mapping(self, output_modules, mapping):
        self.mapping = {p: f'{p}:y' for p in output_modules.keys()}
        if mapping is not None:
            for p in mapping.keys():
                self.mapping[p] = f'{mapping[p][0]}:{mapping[p][1]}'

    def _map_outputs(self, module_results):
        for entry in self.mapping:
            module_results[entry] = module_results.pop(self.mapping[entry])
        return module_results


# ------------------------------ pure-JAX reference --------------------------


def reference_forward(Z, emb_table, rep_params, head_params_list):
    x = emb_table[Z]                                              # (B, N, F)
    h = _ssp(jnp.einsum('bnf,fh->bnh', x, rep_params['w1']) + rep_params['b1'])
    rep = jnp.einsum('bnh,hf->bnf', h, rep_params['w2']) + rep_params['b2']
    outs = []
    for hp in head_params_list:
        g = _ssp(jnp.einsum('bnf,fh->bnh', rep, hp['w1']) + hp['b1'])
        y_atom = jnp.einsum('bnh,ho->bno', g, hp['w2']) + hp['b2']   # (B, N, 1)
        outs.append(jnp.sum(y_atom, axis=1))                         # (B, 1)
    return outs


# ------------------------------ main ----------------------------------------

if __name__ == "__main__":
    # molecules, atoms, feature dim, hidden (lane-dense: F = H = 128)
    B, N, F, H = 2, 8, 128, 128
    n_species = 16

    # deterministic example inputs
    key = jax.random.PRNGKey(0)
    kz, kr = jax.random.split(key)
    Z = jax.random.randint(kz, (B, N), 1, 10, dtype=jnp.int32)
    R = jax.random.normal(kr, (B, N, 3), dtype=jnp.float32)  # unused (no dr)
    inputs = {'_atomic_numbers': Z, '_positions': R}

    # deterministic synthetic parameters
    pkey = jax.random.PRNGKey(42)
    ks = jax.random.split(pkey, 8)

    def dense(k, fin, fout):
        s = 1.0 / math.sqrt(fin)
        return jax.random.uniform(k, (fin, fout), jnp.float32, -s, s)

    emb_table = 0.1 * jax.random.normal(ks[0], (n_species, F), jnp.float32)
    rep_params = {
        'w1': dense(ks[1], F, H), 'b1': jnp.zeros((1, H), jnp.float32),
        'w2': dense(ks[2], H, F), 'b2': jnp.zeros((1, F), jnp.float32),
    }

    def head_params(k1, k2):
        return {
            'w1': dense(k1, F, H), 'b1': jnp.zeros((1, H), jnp.float32),
            'w2': dense(k2, H, 1), 'b2': jnp.zeros((1, 1), jnp.float32),
        }

    energy_p = head_params(ks[3], ks[4])
    homo_p = head_params(ks[5], ks[6])
    output_modules = {
        'energy': Atomwise(energy_p),
        'homo': Atomwise(homo_p),
    }

    model = StateModel(Representation(rep_params, emb_table),
                       output_modules, mapping=None)
    results = model.forward(inputs)

    for k in sorted(results):
        jax.block_until_ready(results[k])
    assert set(results.keys()) == {'energy', 'homo'}
    assert results['energy'].shape == (B, 1) and results['homo'].shape == (B, 1)

    # correctness check against a pure-JAX f32 reference (kernel uses bf16
    # MXU operands with f32 accumulation -> slightly looser tolerance)
    ref_e, ref_h = reference_forward(Z, emb_table, rep_params,
                                     [energy_p, homo_p])
    assert bool(jnp.all(jnp.isfinite(results['energy'])))
    assert bool(jnp.all(jnp.isfinite(results['homo'])))
    assert bool(jnp.allclose(results['energy'], ref_e, rtol=5e-2, atol=1e-2))
    assert bool(jnp.allclose(results['homo'], ref_h, rtol=5e-2, atol=1e-2))

    print("KERNEL_OK")
</pallas_src>

<mosaic_0001>
module attributes {stable_mosaic.version = 11 : i64} {
  func.func @kernel(%arg0: i32, %arg1: memref<16x1xi32, #tpu.memory_space<vmem>>, %arg2: memref<16x128xbf16, #tpu.memory_space<vmem>>, %arg3: memref<1x128xf32, #tpu.memory_space<vmem>>, %arg4: memref<128x128xbf16, #tpu.memory_space<vmem>>, %arg5: memref<1x128xf32, #tpu.memory_space<vmem>>, %arg6: memref<128x256xbf16, #tpu.memory_space<vmem>>, %arg7: memref<1x256xf32, #tpu.memory_space<vmem>>, %arg8: memref<256x128xbf16, #tpu.memory_space<vmem>>, %arg9: memref<1x128xf32, #tpu.memory_space<vmem>>, %arg10: memref<2x128xf32, #tpu.memory_space<vmem>>) attributes {dimension_semantics = [#tpu.dimension_semantics<arbitrary>], iteration_bounds = array<i64: 1>, scalar_prefetch = 0 : i64, scratch_operands = 0 : i64, tpu.core_type = #tpu.core_type<tc>, window_params = [{transform_indices = @transform_0, window_bounds = array<i64: 16, 1>}, {pipeline_mode = #tpu.pipeline_mode<synchronous>, transform_indices = @transform_1, window_bounds = array<i64: 16, 128>}, {pipeline_mode = #tpu.pipeline_mode<synchronous>, transform_indices = @transform_2, window_bounds = array<i64: 1, 128>}, {pipeline_mode = #tpu.pipeline_mode<synchronous>, transform_indices = @transform_3, window_bounds = array<i64: 128, 128>}, {pipeline_mode = #tpu.pipeline_mode<synchronous>, transform_indices = @transform_4, window_bounds = array<i64: 1, 128>}, {pipeline_mode = #tpu.pipeline_mode<synchronous>, transform_indices = @transform_5, window_bounds = array<i64: 128, 256>}, {pipeline_mode = #tpu.pipeline_mode<synchronous>, transform_indices = @transform_6, window_bounds = array<i64: 1, 256>}, {pipeline_mode = #tpu.pipeline_mode<synchronous>, transform_indices = @transform_7, window_bounds = array<i64: 256, 128>}, {pipeline_mode = #tpu.pipeline_mode<synchronous>, transform_indices = @transform_8, window_bounds = array<i64: 1, 128>}, {pipeline_mode = #tpu.pipeline_mode<synchronous>, transform_indices = @transform_9, window_bounds = array<i64: 2, 128>}]} {
    %c0_i32 = arith.constant 0 : i32
    %0 = arith.cmpi eq, %arg0, %c0_i32 : i32
    %1 = arith.extui %0 : i1 to i32
    %c0_i32_0 = arith.constant 0 : i32
    %2 = arith.cmpi ne, %1, %c0_i32_0 : i32
    scf.if %2 {
      %cst_35 = arith.constant 0.000000e+00 : f32
      %75 = vector.broadcast %cst_35 : f32 to vector<2x128xf32>
      %c0_36 = arith.constant 0 : index
      %c0_37 = arith.constant 0 : index
      %76 = vector.load %arg10[%c0_36, %c0_37] : memref<2x128xf32, #tpu.memory_space<vmem>>, vector<2x128xf32>
      tpu.vector_store %arg10[%c0_36, %c0_37], %75 {strides = array<i32>} : memref<2x128xf32, #tpu.memory_space<vmem>>, vector<2x128xf32>,
    } else {
    }
    %c0 = arith.constant 0 : index
    %c0_1 = arith.constant 0 : index
    %3 = vector.load %arg1[%c0, %c0_1] : memref<16x1xi32, #tpu.memory_space<vmem>>, vector<16x1xi32>
    %4 = tpu.iota {dimensions = array<i32: 1>} : vector<16x16xi32>
    %5 = vector.broadcast %3 : vector<16x1xi32> to vector<16x16xi32>
    %6 = arith.cmpi eq, %4, %5 : vector<16x16xi32>
    %7 = arith.extui %6 : vector<16x16xi1> to vector<16x16xi32>
    %8 = arith.sitofp %7 : vector<16x16xi32> to vector<16x16xf32>
    %9 = arith.truncf %8 : vector<16x16xf32> to vector<16x16xbf16>
    %c0_2 = arith.constant 0 : index
    %c0_3 = arith.constant 0 : index
    %10 = vector.load %arg2[%c0_2, %c0_3] : memref<16x128xbf16, #tpu.memory_space<vmem>>, vector<16x128xbf16>
    %cst = arith.constant dense<0.000000e+00> : vector<16x128xf32>
    %11 = tpu.matmul %9, %10, %cst {dimension_numbers = #tpu.dot_dimension_numbers<[1], [0], [0], [1], [0, 0, 1, 1], [], []>} : vector<16x16xbf16>, vector<16x128xbf16>, vector<16x128xf32> -> vector<16x128xf32>
    %c0_4 = arith.constant 0 : index
    %c0_5 = arith.constant 0 : index
    %12 = vector.load %arg3[%c0_4, %c0_5] : memref<1x128xf32, #tpu.memory_space<vmem>>, vector<1x128xf32>
    %13 = vector.broadcast %12 : vector<1x128xf32> to vector<16x128xf32>
    %14 = arith.addf %11, %13 : vector<16x128xf32>
    %cst_6 = arith.constant 0.000000e+00 : f32
    %15 = vector.broadcast %cst_6 : f32 to vector<16x128xf32>
    %16 = arith.maximumf %14, %15 : vector<16x128xf32>
    %17 = math.absf %14 : vector<16x128xf32>
    %cst_7 = arith.constant 0.000000e+00 : f32
    %18 = vector.broadcast %cst_7 : f32 to vector<16x128xf32>
    %19 = arith.subf %18, %17 : vector<16x128xf32>
    %20 = math.exp %19 : vector<16x128xf32>
    %cst_8 = arith.constant 1.000000e+00 : f32
    %21 = vector.broadcast %cst_8 : f32 to vector<16x128xf32>
    %22 = arith.addf %21, %20 : vector<16x128xf32>
    %23 = math.log %22 : vector<16x128xf32>
    %24 = arith.addf %16, %23 : vector<16x128xf32>
    %cst_9 = arith.constant 0.693147182 : f32
    %25 = vector.broadcast %cst_9 : f32 to vector<16x128xf32>
    %26 = arith.subf %24, %25 : vector<16x128xf32>
    %27 = arith.truncf %26 : vector<16x128xf32> to vector<16x128xbf16>
    %c0_10 = arith.constant 0 : index
    %c0_11 = arith.constant 0 : index
    %28 = vector.load %arg4[%c0_10, %c0_11] : memref<128x128xbf16, #tpu.memory_space<vmem>>, vector<128x128xbf16>
    %cst_12 = arith.constant dense<0.000000e+00> : vector<16x128xf32>
    %29 = tpu.matmul %27, %28, %cst_12 {dimension_numbers = #tpu.dot_dimension_numbers<[1], [0], [0], [1], [0, 0, 1, 1], [], []>} : vector<16x128xbf16>, vector<128x128xbf16>, vector<16x128xf32> -> vector<16x128xf32>
    %c0_13 = arith.constant 0 : index
    %c0_14 = arith.constant 0 : index
    %30 = vector.load %arg5[%c0_13, %c0_14] : memref<1x128xf32, #tpu.memory_space<vmem>>, vector<1x128xf32>
    %31 = vector.broadcast %30 : vector<1x128xf32> to vector<16x128xf32>
    %32 = arith.addf %29, %31 : vector<16x128xf32>
    %33 = arith.truncf %32 : vector<16x128xf32> to vector<16x128xbf16>
    %c0_15 = arith.constant 0 : index
    %c0_16 = arith.constant 0 : index
    %34 = vector.load %arg6[%c0_15, %c0_16] : memref<128x256xbf16, #tpu.memory_space<vmem>>, vector<128x256xbf16>
    %cst_17 = arith.constant dense<0.000000e+00> : vector<16x256xf32>
    %35 = tpu.matmul %33, %34, %cst_17 {dimension_numbers = #tpu.dot_dimension_numbers<[1], [0], [0], [1], [0, 0, 1, 1], [], []>} : vector<16x128xbf16>, vector<128x256xbf16>, vector<16x256xf32> -> vector<16x256xf32>
    %c0_18 = arith.constant 0 : index
    %c0_19 = arith.constant 0 : index
    %36 = vector.load %arg7[%c0_18, %c0_19] : memref<1x256xf32, #tpu.memory_space<vmem>>, vector<1x256xf32>
    %37 = vector.broadcast %36 : vector<1x256xf32> to vector<16x256xf32>
    %38 = arith.addf %35, %37 : vector<16x256xf32>
    %cst_20 = arith.constant 0.000000e+00 : f32
    %39 = vector.broadcast %cst_20 : f32 to vector<16x256xf32>
    %40 = arith.maximumf %38, %39 : vector<16x256xf32>
    %41 = math.absf %38 : vector<16x256xf32>
    %cst_21 = arith.constant 0.000000e+00 : f32
    %42 = vector.broadcast %cst_21 : f32 to vector<16x256xf32>
    %43 = arith.subf %42, %41 : vector<16x256xf32>
    %44 = math.exp %43 : vector<16x256xf32>
    %cst_22 = arith.constant 1.000000e+00 : f32
    %45 = vector.broadcast %cst_22 : f32 to vector<16x256xf32>
    %46 = arith.addf %45, %44 : vector<16x256xf32>
    %47 = math.log %46 : vector<16x256xf32>
    %48 = arith.addf %40, %47 : vector<16x256xf32>
    %cst_23 = arith.constant 0.693147182 : f32
    %49 = vector.broadcast %cst_23 : f32 to vector<16x256xf32>
    %50 = arith.subf %48, %49 : vector<16x256xf32>
    %51 = arith.truncf %50 : vector<16x256xf32> to vector<16x256xbf16>
    %c0_24 = arith.constant 0 : index
    %c0_25 = arith.constant 0 : index
    %52 = vector.load %arg8[%c0_24, %c0_25] : memref<256x128xbf16, #tpu.memory_space<vmem>>, vector<256x128xbf16>
    %cst_26 = arith.constant dense<0.000000e+00> : vector<16x128xf32>
    %53 = tpu.matmul %51, %52, %cst_26 {dimension_numbers = #tpu.dot_dimension_numbers<[1], [0], [0], [1], [0, 0, 1, 1], [], []>} : vector<16x256xbf16>, vector<256x128xbf16>, vector<16x128xf32> -> vector<16x128xf32>
    %c0_27 = arith.constant 0 : index
    %c0_28 = arith.constant 0 : index
    %54 = vector.load %arg9[%c0_27, %c0_28] : memref<1x128xf32, #tpu.memory_space<vmem>>, vector<1x128xf32>
    %55 = vector.broadcast %54 : vector<1x128xf32> to vector<16x128xf32>
    %56 = arith.addf %53, %55 : vector<16x128xf32>
    %c16_i32 = arith.constant 16 : i32
    %57 = arith.muli %arg0, %c16_i32 : i32
    %58 = tpu.iota {dimensions = array<i32: 1>} : vector<2x16xi32>
    %59 = vector.broadcast %57 : i32 to vector<2x16xi32>
    %60 = arith.addi %58, %59 : vector<2x16xi32>
    %61 = tpu.iota {dimensions = array<i32: 0>} : vector<2x16xi32>
    %c8_i32 = arith.constant 8 : i32
    %62 = vector.broadcast %c8_i32 : i32 to vector<2x16xi32>
    %63 = arith.muli %61, %62 : vector<2x16xi32>
    %64 = arith.cmpi sge, %60, %63 : vector<2x16xi32>
    %c8_i32_29 = arith.constant 8 : i32
    %65 = vector.broadcast %c8_i32_29 : i32 to vector<2x16xi32>
    %66 = arith.addi %63, %65 : vector<2x16xi32>
    %67 = arith.cmpi slt, %60, %66 : vector<2x16xi32>
    %68 = arith.andi %64, %67 : vector<2x16xi1>
    %69 = arith.extui %68 : vector<2x16xi1> to vector<2x16xi32>
    %70 = arith.sitofp %69 : vector<2x16xi32> to vector<2x16xf32>
    %c0_30 = arith.constant 0 : index
    %c0_31 = arith.constant 0 : index
    %71 = vector.load %arg10[%c0_30, %c0_31] : memref<2x128xf32, #tpu.memory_space<vmem>>, vector<2x128xf32>
    %cst_32 = arith.constant dense<0.000000e+00> : vector<2x128xf32>
    %72 = tpu.matmul %70, %56, %cst_32 {dimension_numbers = #tpu.dot_dimension_numbers<[1], [0], [0], [1], [0, 0, 1, 1], [], []>} : vector<2x16xf32>, vector<16x128xf32>, vector<2x128xf32> -> vector<2x128xf32>
    %73 = arith.addf %71, %72 : vector<2x128xf32>
    %c0_33 = arith.constant 0 : index
    %c0_34 = arith.constant 0 : index
    %74 = vector.load %arg10[%c0_33, %c0_34] : memref<2x128xf32, #tpu.memory_space<vmem>>, vector<2x128xf32>
    tpu.vector_store %arg10[%c0_33, %c0_34], %73 {strides = array<i32>} : memref<2x128xf32, #tpu.memory_space<vmem>>, vector<2x128xf32>,
    return
  }
  func.func @transform_0(%arg0: i32) -> (i32, i32) {
    %c0_i32 = arith.constant 0 : i32
    %c0_i32_0 = arith.constant 0 : i32
    return %arg0, %c0_i32 : i32, i32
  }
  func.func @transform_1(%arg0: i32) -> (i32, i32) {
    %c0_i32 = arith.constant 0 : i32
    %c0_i32_0 = arith.constant 0 : i32
    %c0_i32_1 = arith.constant 0 : i32
    return %c0_i32, %c0_i32_0 : i32, i32
  }
  func.func @transform_2(%arg0: i32) -> (i32, i32) {
    %c0_i32 = arith.constant 0 : i32
    %c0_i32_0 = arith.constant 0 : i32
    %c0_i32_1 = arith.constant 0 : i32
    return %c0_i32, %c0_i32_0 : i32, i32
  }
  func.func @transform_3(%arg0: i32) -> (i32, i32) {
    %c0_i32 = arith.constant 0 : i32
    %c0_i32_0 = arith.constant 0 : i32
    %c0_i32_1 = arith.constant 0 : i32
    return %c0_i32, %c0_i32_0 : i32, i32
  }
  func.func @transform_4(%arg0: i32) -> (i32, i32) {
    %c0_i32 = arith.constant 0 : i32
    %c0_i32_0 = arith.constant 0 : i32
    %c0_i32_1 = arith.constant 0 : i32
    return %c0_i32, %c0_i32_0 : i32, i32
  }
  func.func @transform_5(%arg0: i32) -> (i32, i32) {
    %c0_i32 = arith.constant 0 : i32
    %c0_i32_0 = arith.constant 0 : i32
    %c0_i32_1 = arith.constant 0 : i32
    return %c0_i32, %c0_i32_0 : i32, i32
  }
  func.func @transform_6(%arg0: i32) -> (i32, i32) {
    %c0_i32 = arith.constant 0 : i32
    %c0_i32_0 = arith.constant 0 : i32
    %c0_i32_1 = arith.constant 0 : i32
    return %c0_i32, %c0_i32_0 : i32, i32
  }
  func.func @transform_7(%arg0: i32) -> (i32, i32) {
    %c0_i32 = arith.constant 0 : i32
    %c0_i32_0 = arith.constant 0 : i32
    %c0_i32_1 = arith.constant 0 : i32
    return %c0_i32, %c0_i32_0 : i32, i32
  }
  func.func @transform_8(%arg0: i32) -> (i32, i32) {
    %c0_i32 = arith.constant 0 : i32
    %c0_i32_0 = arith.constant 0 : i32
    %c0_i32_1 = arith.constant 0 : i32
    return %c0_i32, %c0_i32_0 : i32, i32
  }
  func.func @transform_9(%arg0: i32) -> (i32, i32) {
    %c0_i32 = arith.constant 0 : i32
    %c0_i32_0 = arith.constant 0 : i32
    %c0_i32_1 = arith.constant 0 : i32
    return %c0_i32, %c0_i32_0 : i32, i32
  }
}

</mosaic_0001>

<bundles_post_ra>
// kernel: _state_forward.1
= control target key start
LH: loop header
LB: loop body
LE: loop exit
PB: predicated region body
PF: predicated region fallthrough
CT: control target
= control target key end

     0   :  { %14 = vsyncpa [#allocation3], 0  ;;  %s1196_s0 = inlined_call_operand.vmem [shape: s32[16,1], index: 0, kind: input, shape index: {}]   ;;  %s1197_s1 = inlined_call_operand.vmem [shape: bf16[16,128], index: 1, kind: input, shape index: {}]   ;;  %s1198_s2 = inlined_call_operand.vmem [shape: f32[1,128], index: 2, kind: input, shape index: {}]   ;;  %s1199_s3 = inlined_call_operand.hbm [shape: bf16[128,128], index: 3, kind: input, shape index: {}]   ;;  %s1200_s4 = inlined_call_operand.vmem [shape: f32[1,128], index: 4, kind: input, shape index: {}]   ;;  %s1201_s5 = inlined_call_operand.hbm [shape: bf16[128,256], index: 5, kind: input, shape index: {}]   ;;  %s1202_s6 = inlined_call_operand.vmem [shape: f32[1,256], index: 6, kind: input, shape index: {}]   ;;  %s1203_s7 = inlined_call_operand.hbm [shape: bf16[256,128], index: 7, kind: input, shape index: {}]   ;;  %s1204_s8 = inlined_call_operand.vmem [shape: f32[1,128], index: 8, kind: input, shape index: {}]   ;;  %s1205_s9 = inlined_call_operand.vmem [shape: f32[2,128], index: 9, kind: output, shape index: {}]  }
   0x1   :  { %15 = vsyncpa [#allocation5], 0  ;;  %s1035_s30 = smov [#allocation4]   ;;  %s965_s13 = scalar_lea.hbm %s1201_s5, 2048 }
   0x2   :  { %s41_s10 = sshll.u32 %s1035_s30, 4  ;;  %p966_p0 = scmp.ne.s32.totalorder %s1201_s5, %s965_s13  ;;  %s42_s10 = int_to_ptr.vmem [resolvable:$true] %s41_s10 }
   0x3   :  { %p969_p1 = scmp.lt.u32.totalorder %s965_s13, %s1201_s5 }
   0x5   :  { %p971_p2 = pnand %p969_p1, %p966_p0 }
   0x7   :  { %974 = shalt.err (!%p971_p2)
}
   0x8   :  { %s975_s18 = scalar_lea.vmem %s42_s10, 2048  ;;  %p980_p4 = scmp.lt.s32.totalorder %s42_s10, %s42_s10 }
   0x9   :  { %p976_p3 = scmp.ne.s32.totalorder %s42_s10, %s975_s18  ;;  %p981_p5 = scmp.lt.s32.totalorder %s975_s18, %s975_s18 }
   0xb   :  { %p982_p6 = por %p981_p5, %p980_p4 }
   0xd   :  { %p983_p7 = pnand %p982_p6, %p976_p3 }
   0xf   :  { %986 = shalt.err (!%p983_p7)
}
  0x10   :  { %s1036_s19 = smov 128   ;;  %s1037_s20 = smov 8  }
  0x11   :  { %47 = dma.hbm_to_vmem [thread:$0]  %s1201_s5, 2048, %s42_s10, [#allocation5], %s1036_s19, %s1036_s19, %s1037_s20  }
  0x12   :  { %s1038_s23 = smov [#allocation2]   ;;  %s987_s27 = scalar_lea.hbm %s1199_s3, 1024 }
  0x13   :  { %s27_s24 = sshll.u32 %s1038_s23, 4  ;;  %p988_p8 = scmp.ne.s32.totalorder %s1199_s3, %s987_s27  ;;  %s28_s24 = int_to_ptr.vmem [resolvable:$true] %s27_s24 }
  0x14   :  { %p991_p9 = scmp.lt.u32.totalorder %s987_s27, %s1199_s3 }
  0x16   :  { %p993_p10 = pnand %p991_p9, %p988_p8 }
  0x18   :  { %996 = shalt.err (!%p993_p10)
}
  0x19   :  { %s997_s12 = scalar_lea.vmem %s28_s24, 1024  ;;  %p1002_p12 = scmp.lt.s32.totalorder %s28_s24, %s28_s24 }
  0x1a   :  { %p998_p11 = scmp.ne.s32.totalorder %s28_s24, %s997_s12  ;;  %p1003_p13 = scmp.lt.s32.totalorder %s997_s12, %s997_s12 }
  0x1c   :  { %p1004_p0 = por %p1003_p13, %p1002_p12 }
  0x1e   :  { %p1005_p1 = pnand %p1004_p0, %p998_p11 }
  0x20   :  { %1008 = shalt.err (!%p1005_p1)
}
  0x21   :  { %s1039_s5 = smov 64   ;;  %s1040_s10 = smov 4  }
  0x22   :  { %33 = dma.hbm_to_vmem [thread:$0]  %s1199_s3, 1024, %s28_s24, [#allocation3], %s1039_s5, %s1039_s5, %s1040_s10  }
  0x23   :  { %s1041_s15 = smov [#allocation6]   ;;  %s1009_s19 = scalar_lea.hbm %s1203_s7, 2048 }
  0x24   :  { %s55_s16 = sshll.u32 %s1041_s15, 4  ;;  %p1010_p2 = scmp.ne.s32.totalorder %s1203_s7, %s1009_s19  ;;  %s56_s16 = int_to_ptr.vmem [resolvable:$true] %s55_s16 }
  0x25   :  { %p1013_p3 = scmp.lt.u32.totalorder %s1009_s19, %s1203_s7 }
  0x27   :  { %p1015_p4 = pnand %p1013_p3, %p1010_p2 }
  0x29   :  { %1018 = shalt.err (!%p1015_p4)
}
  0x2a   :  { %s1019_s25 = scalar_lea.vmem %s56_s16, 2048  ;;  %p1024_p6 = scmp.lt.s32.totalorder %s56_s16, %s56_s16 }
  0x2b   :  { %p1020_p5 = scmp.ne.s32.totalorder %s56_s16, %s1019_s25  ;;  %p1025_p7 = scmp.lt.s32.totalorder %s1019_s25, %s1019_s25 }
  0x2d   :  { %p1026_p8 = por %p1025_p7, %p1024_p6 }
  0x2f   :  { %p1027_p9 = pnand %p1026_p8, %p1020_p5 }
  0x31   :  { %1030 = shalt.err (!%p1027_p9)
}
  0x32   :  { %61 = dma.hbm_to_vmem [thread:$0]  %s1203_s7, 2048, %s56_s16, [#allocation5], %s1039_s5, %s1039_s5, %s1040_s10  }
  0x33   :  { %1031 = dma.done.wait [#allocation3], 1024  }
  0x34   :  { %1032 = vsyncadd [#allocation3], 4294966272 }
  0x35   :  { %1033 = dma.done.wait [#allocation5], 4096  }
  0x36   :  { %1034 = vsyncadd [#allocation5], 4294963200  ;;  %v1042_v0 = vmov 0   ;;  %v1043_v1 = vmov 0.0   ;;  %v79_v2 = vld [vmem:[%s1196_s0] sm:$0xff]  ;;  %v80_v3 = vld [vmem:[%s1196_s0 + $0x8] sm:$0xff]  ;;  %v81_v5 = vlaneseq }
  0x37   :  { %891 = vset.pattern.permute.xlu0 %v1042_v0  ;;  %78 = vst [vmem:[%s1205_s9] sm:$0x3] %v1043_v1  ;;  %844 = vmatprep.subr.bf16.mxu0 %v1043_v1  ;;  %v892_v4 = vld [vmem:[%s1197_s1] sm:$0xff]   ;;  %vm1044_vm0 = vmmov 0   ;;  %vm111_vm3 = vcmask 130048   ;;  %v894_v13 = vld [vmem:[#allocation2 + $0x8] sm:$0xff]   ;;  %v895_v14 = vld [vmem:[#allocation2 + $0x10] sm:$0xff]  }
  0x38   :  { %850 = vmatprep.subr.bf16.mxu1 %v1043_v1  ;;  %84 = vperm.xlu0 %891, %v79_v2   ;;  %v1152_v6 = vand.u32 127, %v81_v5  ;;  %v893_v12 = vld [vmem:[#allocation2] sm:$0xff]   ;;  %v896_v15 = vld [vmem:[#allocation2 + $0x18] sm:$0xff]   ;;  %v898_v17 = vld [vmem:[#allocation2 + $0x28] sm:$0xff]  }
  0x39   :  { %845 = vmatpush3.bf16.msra.mxu0 %v892_v4  ;;  %846 = vmatprep.mubr.msk.bf16.mxu0 %vm1044_vm0, %v1043_v1  ;;  %v897_v16 = vld [vmem:[#allocation2 + $0x20] sm:$0xff]   ;;  %v899_v18 = vld [vmem:[#allocation2 + $0x30] sm:$0xff]   ;;  %v900_v19 = vld [vmem:[#allocation2 + $0x38] sm:$0xff]  }
  0x3a   :  { %866 = vmatprep.mubr.msk.bf16.mxu1 %vm1044_vm0, %v1043_v1  ;;  %851 = vmatpush3.bf16.msra.mxu1 %v893_v12  ;;  %v901_v20 = vld [vmem:[#allocation4] ss:$8 sps:$4 sm:$0xff]   ;;  %v903_v21 = vld [vmem:[#allocation4 + $0x4] ss:$8 sps:$4 sm:$0xff]   ;;  %v906_v22 = vld [vmem:[#allocation4 + $0x14] ss:$8 sps:$4 sm:$0xff]  }
  0x3b   :  { %852 = vmatprep.subr.bf16.mxu1 %v1043_v1  ;;  %398 = vmatprep.subr.bf16.mxu0 %v903_v21  ;;  %v904_v23 = vld [vmem:[#allocation4 + $0x10] ss:$8 sps:$4 sm:$0xff]   ;;  %v909_v24 = vld [vmem:[#allocation4 + $0x24] ss:$8 sps:$4 sm:$0xff]   ;;  %v907_v25 = vld [vmem:[#allocation4 + $0x20] ss:$8 sps:$4 sm:$0xff]  }
  0x3c   :  { %87 = vperm.xlu0 %891, %v80_v3   ;;  %v912_v26 = vld [vmem:[#allocation4 + $0x34] ss:$8 sps:$4 sm:$0xff]   ;;  %v910_v27 = vld [vmem:[#allocation4 + $0x30] ss:$8 sps:$4 sm:$0xff]   ;;  %v915_v28 = vld [vmem:[#allocation4 + $0x44] ss:$8 sps:$4 sm:$0xff]  }
  0x3d   :  { %v913_v29 = vld [vmem:[#allocation4 + $0x40] ss:$8 sps:$4 sm:$0xff]   ;;  %v918_v30 = vld [vmem:[#allocation4 + $0x54] ss:$8 sps:$4 sm:$0xff]   ;;  %v916_v31 = vld [vmem:[#allocation4 + $0x50] ss:$8 sps:$4 sm:$0xff]  }
  0x3e   :  { %853 = vmatpush3.bf16.msra.mxu1 %v894_v13  ;;  %v921_v32 = vld [vmem:[#allocation4 + $0x64] ss:$8 sps:$4 sm:$0xff]   ;;  %v919_v33 = vld [vmem:[#allocation4 + $0x60] ss:$8 sps:$4 sm:$0xff]   ;;  %v924_v62 = vld [vmem:[#allocation4 + $0x74] ss:$8 sps:$4 sm:$0xff]  }
  0x3f   :  { %854 = vmatprep.subr.bf16.mxu1 %v1043_v1  ;;  %v755_v34 = vld [vmem:[%s1198_s2] ss:$0 sm:$0xff]  ;;  %v922_v63 = vld [vmem:[#allocation4 + $0x70] ss:$8 sps:$4 sm:$0xff]   ;;  %v927_v13 = vld [vmem:[#allocation6 + $0x48] sm:$0xff]  }
  0x40   :  { %v926_v12 = vld [vmem:[#allocation6] sm:$0xff]   ;;  %v935_v21 = vld [vmem:[#allocation6 + $0x68] sm:$0xff]  }
  0x42   :  { %855 = vmatpush3.bf16.msra.mxu1 %v895_v14  ;;  %v928_v14 = vld [vmem:[#allocation6 + $0x8] sm:$0xff]  }
  0x43   :  { %856 = vmatprep.subr.bf16.mxu1 %v1043_v1 }
  0x46   :  { %857 = vmatpush3.bf16.msra.mxu1 %v896_v15  ;;  %v929_v15 = vld [vmem:[#allocation6 + $0x50] sm:$0xff]  }
  0x47   :  { %858 = vmatprep.subr.bf16.mxu1 %v1043_v1 }
  0x4a   :  { %859 = vmatpush3.bf16.msra.mxu1 %v897_v16  ;;  %v930_v16 = vld [vmem:[#allocation6 + $0x10] sm:$0xff]  }
  0x4b   :  { %860 = vmatprep.subr.bf16.mxu1 %v1043_v1 }
  0x4e   :  { %861 = vmatpush3.bf16.msra.mxu1 %v898_v17  ;;  %v931_v17 = vld [vmem:[#allocation6 + $0x58] sm:$0xff]  }
  0x4f   :  { %862 = vmatprep.subr.bf16.mxu1 %v1043_v1 }
  0x52   :  { %863 = vmatpush3.bf16.msra.mxu1 %v899_v18  ;;  %v932_v18 = vld [vmem:[#allocation6 + $0x18] sm:$0xff]  }
  0x53   :  { %864 = vmatprep.subr.bf16.mxu1 %v1043_v1 }
  0x56   :  { %865 = vmatpush3.bf16.msra.mxu1 %v900_v19  ;;  %v933_v19 = vld [vmem:[#allocation6 + $0x60] sm:$0xff]  }
  0xb7   :  { %v85_v7 = vpop.permute.xlu0 %84 }
  0xb8   :  { %vm89_vm1 = vcmp.eq.s32.totalorder %v1152_v6, %v85_v7 }
  0xb9   :  { %v753_v9 = vsel %vm89_vm1, 1.0, %v1043_v1 }
  0xbb   :  { %v88_v8 = vpop.permute.xlu0 %87 }
  0xbc   :  { %vm90_vm2 = vcmp.eq.s32.totalorder %v1152_v6, %v88_v8 }
  0xbd   :  { %v754_v10 = vsel %vm90_vm2, 1.0, %v1043_v1 }
  0xbe   :  { %v95_v11 = vpack.c.bf16 %v754_v10, %v753_v9 }
  0xc0   :  { %847 = vmatmul.mubr.msk.bf16.vlgmr.msra.gmra.mrb[0].mxu0 %vm111_vm3, %v95_v11  ;;  %v925_v11 = vld [vmem:[#allocation6 + $0x40] sm:$0xff]  }
  0xc1   :  { %430 = vmatprep.mubr.bf16.mxu0 %v1042_v0  ;;  %399 = vmatpush1.bf16.msra.mxu0 %v901_v20  ;;  %v760_v0 = vld [vmem:[%s1200_s4] ss:$0 sm:$0xff] }
  0xc2   :  { %400 = vmatprep.subr.bf16.mxu0 %v906_v22  ;;  %819 = vmatprep.subr.bf16.mxu1 %v925_v11  ;;  %v934_v20 = vld [vmem:[#allocation6 + $0x20] sm:$0xff]   ;;  %v936_v22 = vld [vmem:[#allocation6 + $0x28] sm:$0xff]  }
  0xc5   :  { %401 = vmatpush1.bf16.msra.mxu0 %v904_v23  ;;  %v937_v23 = vld [vmem:[#allocation6 + $0x70] sm:$0xff]  }
  0xc6   :  { %402 = vmatprep.subr.bf16.mxu0 %v909_v24  ;;  %v938_v24 = vld [vmem:[#allocation6 + $0x30] sm:$0xff]  }
  0xc9   :  { %403 = vmatpush1.bf16.msra.mxu0 %v907_v25  ;;  %v939_v25 = vld [vmem:[#allocation6 + $0x78] sm:$0xff]  }
  0xca   :  { %404 = vmatprep.subr.bf16.mxu0 %v912_v26  ;;  %v940_v26 = vld [vmem:[#allocation6 + $0x38] sm:$0xff]  }
  0xcd   :  { %405 = vmatpush1.bf16.msra.mxu0 %v910_v27  ;;  %v1175_v27 = vshrl.u32 %v81_v5, 7 }
  0xce   :  { %406 = vmatprep.subr.bf16.mxu0 %v915_v28 }
  0xcf   :  { %v310_v28 = vsub.s32 0, %v1175_v27 }
  0xd1   :  { %407 = vmatpush1.bf16.msra.mxu0 %v913_v29  ;;  %v306_v29 = vld [vmem:[%s1202_s6] sm:$0x3] }
  0xd2   :  { %408 = vmatprep.subr.bf16.mxu0 %v918_v30  ;;  %v314_v30 = vsub.s32 1, %v1175_v27 }
  0xd5   :  { %409 = vmatpush1.bf16.msra.mxu0 %v916_v31  ;;  %v311_v31 = vrot.slane %v306_v29, %v310_v28 }
  0xd6   :  { %410 = vmatprep.subr.bf16.mxu0 %v921_v32  ;;  %v315_v32 = vrot.slane %v306_v29, %v314_v30  ;;  %v789_v29 = vld [vmem:[%s1204_s8] ss:$0 sm:$0xff] }
  0xd9   :  { %411 = vmatpush1.bf16.msra.mxu0 %v919_v33 }
  0xda   :  { %412 = vmatprep.subr.bf16.mxu0 %v924_v62 }
  0xdd   :  { %413 = vmatpush1.bf16.msra.mxu0 %v922_v63 }
 0x193   :  { %v149_v35 = vpop.f32.mrb[0].mxu0 }
 0x194   :  { %v150_v36 = vadd.f32 %v755_v34, %v149_v35  ;;  %v848_v37 = vpop.f32.mrb[1].mxu0 }
 0x195   :  { %v152_v38 = vpop.f32.mrb[2].mxu0 }
 0x196   :  { %v158_v39 = vand.u32 2147483647, %v150_v36  ;;  %v153_v40 = vadd.f32 %v755_v34, %v152_v38  ;;  %v849_v41 = vpop.f32.mrb[3].mxu0  ;;  %v156_v52 = vmax.f32 %v150_v36, 0.0 }
 0x198   :  { %v160_v42 = vsub.f32 0.0, %v158_v39  ;;  %v159_v43 = vand.u32 2147483647, %v153_v40  ;;  %v157_v56 = vmax.f32 %v153_v40, 0.0 }
 0x19a   :  { %v162_v44 = vmul.f32 1.442695, %v160_v42  ;;  %v161_v45 = vsub.f32 0.0, %v159_v43 }
 0x19c   :  { %941 = vpow2.f32 %v162_v44  ;;  %v164_v46 = vmul.f32 1.442695, %v161_v45 }
 0x19e   :  { %943 = vpow2.f32 %v164_v46 }
 0x1a6   :  { %v942_v47 = vpop.eup %941 }
 0x1a7   :  { %v166_v48 = vadd.f32 1.0, %v942_v47 }
 0x1a8   :  { %v944_v49 = vpop.eup %943 }
 0x1a9   :  { %945 = vlog2.f32 %v166_v48  ;;  %v167_v50 = vadd.f32 1.0, %v944_v49 }
 0x1ab   :  { %947 = vlog2.f32 %v167_v50 }
 0x1b3   :  { %v946_v51 = vpop.eup %945 }
 0x1b4   :  { %v169_v53 = vmul.f32 0.6931472, %v946_v51 }
 0x1b5   :  { %v948_v54 = vpop.eup %947 }
 0x1b6   :  { %v172_v55 = vadd.f32 %v169_v53, %v156_v52  ;;  %v171_v57 = vmul.f32 0.6931472, %v948_v54 }
 0x1b8   :  { %v173_v58 = vadd.f32 %v171_v57, %v157_v56  ;;  %v758_v59 = vadd.f32 -0.6931472, %v172_v55 }
 0x1ba   :  { %v759_v60 = vadd.f32 -0.6931472, %v173_v58 }
 0x1bc   :  { %v176_v61 = vpack.c.bf16 %v759_v60, %v758_v59 }
 0x1be   :  { %867 = vmatmul.mubr.bf16.vlgmr.msra.gmra.mrb[0].mxu1 %v176_v61 }
 0x1bf   :  { %820 = vmatpush3.bf16.msra.mxu1 %v926_v12 }
 0x1c0   :  { %821 = vmatprep.subr.bf16.mxu1 %v927_v13 }
 0x1c3   :  { %822 = vmatpush3.bf16.msra.mxu1 %v928_v14 }
 0x1c4   :  { %823 = vmatprep.subr.bf16.mxu1 %v929_v15 }
 0x1c7   :  { %824 = vmatpush3.bf16.msra.mxu1 %v930_v16 }
 0x1c8   :  { %825 = vmatprep.subr.bf16.mxu1 %v931_v17 }
 0x1cb   :  { %826 = vmatpush3.bf16.msra.mxu1 %v932_v18 }
 0x1cc   :  { %827 = vmatprep.subr.bf16.mxu1 %v933_v19 }
 0x1cf   :  { %828 = vmatpush3.bf16.msra.mxu1 %v934_v20 }
 0x1d0   :  { %829 = vmatprep.subr.bf16.mxu1 %v935_v21  ;;  %v1045_v21 = vmov 0.0|0.0  }
 0x1d1   :  { %877 = vmatprep.subr.bf16.mxu0 %v1045_v21 }
 0x1d3   :  { %830 = vmatpush3.bf16.msra.mxu1 %v936_v22  ;;  %v664_v22 = vmul.u32 8, %v1175_v27 }
 0x1d4   :  { %831 = vmatprep.subr.bf16.mxu1 %v937_v23 }
 0x1d5   :  { %vm665_vm4 = vcmp.ge.s32.totalorder %v1152_v6, %v664_v22 }
 0x1d7   :  { %832 = vmatpush3.bf16.msra.mxu1 %v938_v24  ;;  %v666_v24 = vadd.s32 8, %v664_v22 }
 0x1d8   :  { %833 = vmatprep.subr.bf16.mxu1 %v939_v25 }
 0x1d9   :  { %vm667_vm5 = vcmp.lt.s32.totalorder %v1152_v6, %v666_v24 }
 0x1da   :  { %vm668_vm6 = vmand %vm665_vm4, %vm667_vm5 }
 0x1db   :  { %834 = vmatpush3.bf16.msra.mxu1 %v940_v26  ;;  %v806_v27 = vsel %vm668_vm6, 1.0, %v1043_v1 }
 0x291   :  { %v282_v2 = vpop.f32.mrb[0].mxu1 }
 0x292   :  { %v868_v3 = vpop.f32.mrb[1].mxu1  ;;  %v283_v7 = vadd.f32 %v760_v0, %v282_v2 }
 0x293   :  { %v285_v4 = vpop.f32.mrb[2].mxu1 }
 0x294   :  { %v286_v8 = vadd.f32 %v760_v0, %v285_v4  ;;  %v869_v9 = vpop.f32.mrb[3].mxu1 }
 0x296   :  { %v289_v10 = vpack.c.bf16 %v286_v8, %v283_v7 }
 0x298   :  { %431 = vmatmul.mubr.bf16.vlgmr.msra.gmra.mrb[4].mxu0 %v289_v10 }
 0x299   :  { %874 = vmatprep.mubr.msk.f32.mxu0 %vm1044_vm0, %v1043_v1 }
 0x36b   :  { %v432_v33 = vpop.f32.mrb[4].mxu0 }
 0x36c   :  { %v433_v34 = vadd.f32 %v432_v33, %v311_v31  ;;  %v434_v35 = vpop.f32.mrb[5].mxu0 }
 0x36d   :  { %v435_v36 = vadd.f32 %v434_v35, %v315_v32  ;;  %v436_v37 = vpop.f32.mrb[6].mxu0  ;;  %v671_v35 = vld [vmem:[%s1205_s9] sm:$0x3] }
 0x36e   :  { %v445_v38 = vand.u32 2147483647, %v433_v34  ;;  %v437_v39 = vadd.f32 %v436_v37, %v311_v31  ;;  %v438_v40 = vpop.f32.mrb[7].mxu0  ;;  %v441_v62 = vmax.f32 %v433_v34, 0.0 }
 0x36f   :  { %v446_v5 = vand.u32 2147483647, %v435_v36  ;;  %v439_v41 = vadd.f32 %v438_v40, %v315_v32  ;;  %v442_v2 = vmax.f32 %v435_v36, 0.0 }
 0x370   :  { %v449_v42 = vsub.f32 0.0, %v445_v38  ;;  %v447_v43 = vand.u32 2147483647, %v437_v39  ;;  %v443_v8 = vmax.f32 %v437_v39, 0.0 }
 0x371   :  { %v450_v44 = vsub.f32 0.0, %v446_v5  ;;  %v448_v45 = vand.u32 2147483647, %v439_v41  ;;  %v444_v11 = vmax.f32 %v439_v41, 0.0 }
 0x372   :  { %v453_v46 = vmul.f32 1.442695, %v449_v42  ;;  %v451_v47 = vsub.f32 0.0, %v447_v43 }
 0x373   :  { %v455_v48 = vmul.f32 1.442695, %v450_v44  ;;  %v452_v49 = vsub.f32 0.0, %v448_v45 }
 0x374   :  { %949 = vpow2.f32 %v453_v46  ;;  %v457_v50 = vmul.f32 1.442695, %v451_v47 }
 0x375   :  { %951 = vpow2.f32 %v455_v48  ;;  %v459_v51 = vmul.f32 1.442695, %v452_v49 }
 0x376   :  { %953 = vpow2.f32 %v457_v50 }
 0x377   :  { %955 = vpow2.f32 %v459_v51 }
 0x37e   :  { %v950_v52 = vpop.eup %949 }
 0x37f   :  { %v952_v53 = vpop.eup %951  ;;  %v461_v54 = vadd.f32 1.0, %v950_v52 }
 0x380   :  { %v954_v55 = vpop.eup %953  ;;  %v462_v56 = vadd.f32 1.0, %v952_v53 }
 0x381   :  { %v956_v57 = vpop.eup %955  ;;  %957 = vlog2.f32 %v461_v54  ;;  %v463_v58 = vadd.f32 1.0, %v954_v55 }
 0x382   :  { %959 = vlog2.f32 %v462_v56  ;;  %v464_v59 = vadd.f32 1.0, %v956_v57 }
 0x383   :  { %961 = vlog2.f32 %v463_v58 }
 0x384   :  { %963 = vlog2.f32 %v464_v59 }
 0x38b   :  { %v958_v60 = vpop.eup %957 }
 0x38c   :  { %v960_v61 = vpop.eup %959  ;;  %v466_v63 = vmul.f32 0.6931472, %v958_v60 }
 0x38d   :  { %v962_v0 = vpop.eup %961  ;;  %v468_v3 = vmul.f32 0.6931472, %v960_v61 }
 0x38e   :  { %v964_v4 = vpop.eup %963  ;;  %v473_v7 = vadd.f32 %v466_v63, %v441_v62  ;;  %v470_v9 = vmul.f32 0.6931472, %v962_v0 }
 0x38f   :  { %v474_v10 = vadd.f32 %v468_v3, %v442_v2  ;;  %v472_v12 = vmul.f32 0.6931472, %v964_v4 }
 0x390   :  { %v475_v13 = vadd.f32 %v470_v9, %v443_v8  ;;  %v785_v15 = vadd.f32 -0.6931472, %v473_v7 }
 0x391   :  { %v476_v14 = vadd.f32 %v472_v12, %v444_v11  ;;  %v786_v17 = vadd.f32 -0.6931472, %v474_v10 }
 0x392   :  { %v787_v16 = vadd.f32 -0.6931472, %v475_v13 }
 0x393   :  { %v788_v18 = vadd.f32 -0.6931472, %v476_v14 }
 0x394   :  { %v481_v19 = vpack.c.bf16 %v787_v16, %v785_v15 }
 0x395   :  { %v482_v20 = vpack.c.bf16 %v788_v18, %v786_v17 }
 0x397   :  { %650 = vmatprep.mubr.bf16.mxu1 %v482_v20 }
 0x398   :  { %651 = vmatmul.mubr.bf16.vlgmr.msra.gmra.mrb[4].mxu1 %v481_v19 }
 0x46b   :  { %v835_v23 = vpop.f32.mrb[4].mxu1 }
 0x46c   :  { %v836_v25 = vpop.f32.mrb[5].mxu1 }
 0x46d   :  { %v837_v26 = vadd.f32 %v836_v25, %v835_v23  ;;  %v838_v28 = vpop.f32.mrb[6].mxu1 }
 0x46e   :  { %v839_v30 = vpop.f32.mrb[7].mxu1 }
 0x46f   :  { %v840_v31 = vadd.f32 %v839_v30, %v838_v28  ;;  %v653_v32 = vadd.f32 %v837_v26, %v789_v29 }
 0x471   :  { %v656_v33 = vadd.f32 %v840_v31, %v789_v29 }
 0x473   :  { %v878_v34 = vpack.c.bf16 %v656_v33, %v653_v32 }
 0x475   :  { %879 = vmatpush3.bf16.msra.mxu0 %v878_v34 }
 0x478   :  { %875 = vmatmul.mubr.msk.f32.vlgmr.msra.gmra.mrb[8].mxu0 %vm111_vm3, %v806_v27 }
 0x54b   :  { %v741_v36 = vpop.f32.mrb[8].mxu0 }
 0x54c   :  { %v745_v37 = vadd.f32 %v741_v36, %v671_v35  ;;  %v876_v38 = vpop.f32.mrb[9].mxu0 }
 0x54e   :  { %746 = vst [vmem:[%s1205_s9] sm:$0x3] %v745_v37 }
 0x54f   :  { %751 = vsyncpa [#allocation3], 1 }
 0x550   :  { %752 = vsyncpa [#allocation5], 1 }

</bundles_post_ra>
